<compile_context>
chip_gen: v7x
topology: tpu7x:2x2x1
jax: 0.10.0
libtpu: 0.0.40
codegen_flags: <defaults>
</compile_context>

<pallas_src>
import jax
import jax.numpy as jnp
from jax.experimental import pallas as pl
from jax.experimental.pallas import tpu as pltpu

LANE = 128


# --------------------------------------------------------------------------
# Block-Toeplitz expansion of a 3x3 "same" conv (horizontal taps + horizontal
# zero padding folded into the weights).
# --------------------------------------------------------------------------
def _toeplitz3x3(w_hwio, W):
    """(3,3,Cin,Cout) HWIO weight -> (3, W*Cin, W*Cout) block-Toeplitz.

    big[dh, wq*Cin+ci, w*Cout+co] = w_hwio[dh, wq-w+1, ci, co] if |wq-w| <= 1
    else 0, so that (x_row @ big[dh]) performs the full horizontal sweep
    (including implicit zero padding) for kernel row dh."""
    KH, KW, Cin, Cout = w_hwio.shape
    wq = jnp.arange(W)[:, None]
    w = jnp.arange(W)[None, :]
    dw = wq - w + 1                                    # (W, W)
    valid = (dw >= 0) & (dw < KW)
    taps = w_hwio[:, jnp.clip(dw, 0, KW - 1)]          # (KH, W, W, Cin, Cout)
    taps = jnp.where(valid[None, :, :, None, None], taps, 0.0)
    taps = jnp.transpose(taps, (0, 1, 3, 2, 4))        # (KH, wq, ci, w, co)
    return taps.reshape(KH, W * Cin, W * Cout)


# --------------------------------------------------------------------------
# Synthetic model (named submodules), mirroring torch nn.Modules
# --------------------------------------------------------------------------
def init_conv_params(key, cin, cout, k=3):
    """Deterministic PyTorch-style (OIHW weight, bias) init."""
    wkey, bkey = jax.random.split(key)
    bound = 1.0 / float(jnp.sqrt(cin * k * k))
    w = jax.random.uniform(wkey, (cout, cin, k, k), jnp.float32, -bound, bound)
    b = jax.random.uniform(bkey, (cout,), jnp.float32, -bound, bound)
    return w, b


class Conv2dSame:
    """Mirrors nn.Conv2d(cin, cout, 3, padding=1); weights stored OIHW."""

    def __init__(self, w_oihw, bias):
        self.w_oihw = w_oihw
        self.w_hwio = jnp.transpose(w_oihw, (2, 3, 1, 0))
        self.bias = bias
        self.cin = int(w_oihw.shape[1])
        self.cout = int(bias.shape[0])
        self._prep = {}     # (W, cin_work) -> (wide bf16 weight, f32 bias row)

    def prepared(self, W, cin_work):
        """Wide-K weight (3*W*cin_work, W*cout) bf16 + lane-tiled f32 bias."""
        key = (W, cin_work)
        if key not in self._prep:
            w = self.w_hwio
            if cin_work > self.cin:
                # zero rows for the padded external-input channels: exact.
                w = jnp.pad(w, ((0, 0), (0, 0), (0, cin_work - self.cin), (0, 0)))
            big = _toeplitz3x3(w, W)                       # (3, W*cin_work, W*cout)
            wide = big.reshape(3 * W * cin_work, W * self.cout).astype(jnp.bfloat16)
            bt = jnp.tile(self.bias, W).reshape(1, W * self.cout)
            self._prep[key] = (wide, bt)
        return self._prep[key]


class ReLU:
    """Marker module (fused into the conv chain inside the kernel)."""


class TinyBackbone:
    """Synthetic model with named _modules, like a torch nn.Module."""

    def __init__(self, key):
        k1, k2, k3 = jax.random.split(key, 3)
        self._modules = {
            "conv1": Conv2dSame(*init_conv_params(k1, 4, 8)),
            "relu1": ReLU(),
            "conv2": Conv2dSame(*init_conv_params(k2, 8, 8)),
            "relu2": ReLU(),
            # conv3 exists but is never executed thanks to the early break.
            "conv3": Conv2dSame(*init_conv_params(k3, 8, 16)),
        }


# --------------------------------------------------------------------------
# IntermediateLayerGetter: same forward semantics, one fused Pallas kernel
# --------------------------------------------------------------------------
class IntermediateLayerGetter:
    """JAX/Pallas re-implementation of the PyTorch IntermediateLayerGetter."""

    def __init__(self, model, return_layers):
        self.model = model
        self.return_layers = dict(return_layers)
        self._cache = {}

    # -- forward-loop semantics, identical to the torch module ------------
    def _plan(self):
        plan, captured = [], []
        for name, module in self.model._modules.items():
            plan.append((name, module))
            if name in self.return_layers:
                captured.append(name)
            if len(captured) == len(self.return_layers):
                break
        return plan, captured

    def __call__(self, x_nchw):
        key = (tuple(x_nchw.shape), str(x_nchw.dtype))
        if key not in self._cache:
            self._cache[key] = self._build(x_nchw.shape)
        run, captured = self._cache[key]
        feats = run(x_nchw)
        return {self.return_layers[name]: feats[name] for name in captured}

    # -- fused-kernel construction -----------------------------------------
    def _build(self, x_shape):
        N, Cin, H, W = x_shape
        plan, captured = self._plan()
        capture_set = set(captured)

        # v5e K-alignment: pad external-input channels so W*Cin is a multiple
        # of 128 (only when cheap).  Weight rows for padded channels are zero,
        # so the result is exact.
        cin_work = Cin
        if (W * Cin) % LANE != 0 and W * Cin < LANE and LANE % W == 0:
            cin_work = LANE // W
        # TODO(synk): in-kernel activations whose W*cout is not a multiple of
        # 128 (and captures taken before the first conv with padded channels)
        # are not re-aligned here.

        # Batch tile per grid step: amortize per-step overhead, fill MXU rows.
        # (At tiny N this makes grid=(1,); at larger N the "parallel" grid
        # axis still shards across TensorCores on v7x.)
        b_tile = max(1, min(N, 256 // max(H, 1)))
        while N % b_tile:
            b_tile -= 1
        M = b_tile * H

        steps = []            # ("conv", conv_idx, capture) | ("relu", None, capture)
        params = []           # flattened [wide_weight, bias_row] per conv
        cap_channels = []
        chan = cin_work
        flops = 0
        for name, module in plan:
            if isinstance(module, Conv2dSame):
                wide, bt = module.prepared(W, chan)
                params += [wide, bt]
                flops += 2 * N * H * int(wide.shape[0]) * int(wide.shape[1])
                chan = module.cout
                steps.append(("conv", len(params) // 2 - 1, name in capture_set))
            elif isinstance(module, ReLU):
                steps.append(("relu", None, name in capture_set))
            else:
                # TODO(synk): arbitrary submodules would need a per-module
                # fallback path; this synthetic backbone only uses conv/relu.
                raise NotImplementedError(type(module))
            if name in capture_set:
                cap_channels.append(chan)

        n_conv = len(params) // 2

        def kernel(*refs):
            x_ref = refs[0]
            w_refs = refs[1:1 + 2 * n_conv]
            out_refs = refs[1 + 2 * n_conv:]

            # Hoisted + cached per-width boundary masks (JAX does not CSE
            # iota/broadcast, so build them once and reuse for every conv).
            mask_cache = {}

            def row_masks(width):
                if width not in mask_cache:
                    row = jax.lax.broadcasted_iota(
                        jnp.int32, (b_tile, H, width), 1).reshape(M, width)
                    mask_cache[width] = (row >= 1, row <= H - 2)
                return mask_cache[width]

            cur = x_ref[...].reshape(M, x_ref.shape[-1])   # (M, W*Cin) f32
            out_i = 0
            for kind, idx, cap in steps:                   # static plan, unrolled
                if kind == "conv":
                    width = cur.shape[-1]
                    m_top, m_bot = row_masks(width)
                    # row r of `up` holds input row r-1; of `dn`, row r+1.
                    up = pltpu.roll(cur, shift=1, axis=0)
                    dn = pltpu.roll(cur, shift=M - 1, axis=0)
                    lhs = jnp.concatenate(
                        [jnp.where(m_top, up, 0.0), cur,
                         jnp.where(m_bot, dn, 0.0)],
                        axis=-1).astype(jnp.bfloat16)       # (M, 3*width) bf16
                    cur = jnp.dot(lhs, w_refs[2 * idx][...],
                                  preferred_element_type=jnp.float32)
                    cur = cur + w_refs[2 * idx + 1][...]    # bias epilogue
                else:                                       # relu
                    cur = jnp.maximum(cur, 0.0)
                if cap:
                    o = out_refs[out_i]
                    o[...] = cur.reshape(o.shape).astype(o.dtype)
                    out_i += 1

        x_spec = pl.BlockSpec((b_tile, H, W * cin_work), lambda n: (n, 0, 0))
        # Grid-invariant weights/bias: one resident VMEM copy, no pipelining.
        w_spec = pl.BlockSpec(memory_space=pltpu.MemorySpace.VMEM)
        in_specs = [x_spec] + [w_spec] * len(params)
        out_shape = tuple(jax.ShapeDtypeStruct((N, H, W * c), jnp.float32)
                          for c in cap_channels)
        out_specs = tuple(pl.BlockSpec((b_tile, H, W * c), lambda n: (n, 0, 0))
                          for c in cap_channels)

        bytes_accessed = (N * H * W * cin_work * 4
                          + sum(int(p.size) * p.dtype.itemsize for p in params)
                          + sum(N * H * W * c * 4 for c in cap_channels))

        fused = pl.pallas_call(
            kernel,
            out_shape=out_shape,
            grid=(N // b_tile,),
            in_specs=in_specs,
            out_specs=out_specs,
            compiler_params=pltpu.CompilerParams(
                dimension_semantics=("parallel",),
                vmem_limit_bytes=32 * 1024 * 1024),
            cost_estimate=pl.CostEstimate(flops=flops, transcendentals=0,
                                          bytes_accessed=bytes_accessed),
        )

        def run(x_nchw):
            # NCHW -> lane-flattened NHWC (+ channel zero-pad) once, at the
            # jit boundary — not per captured layer.
            x_nhwc = jnp.transpose(x_nchw, (0, 2, 3, 1)).astype(jnp.float32)
            if cin_work > Cin:
                x_nhwc = jnp.pad(
                    x_nhwc, ((0, 0), (0, 0), (0, 0), (0, cin_work - Cin)))
            x2d = x_nhwc.reshape(N, H, W * cin_work)
            outs = fused(x2d, *params)
            feats = {}
            for name, c, o in zip(captured, cap_channels, outs):
                feats[name] = jnp.transpose(o.reshape(N, H, W, c), (0, 3, 1, 2))
            return feats

        return jax.jit(run), captured


# --------------------------------------------------------------------------
# Reference (pure JAX, f32) for validation
# --------------------------------------------------------------------------
def ref_conv(x_nchw, w_oihw, bias):
    y = jax.lax.conv_general_dilated(
        x_nchw, w_oihw, window_strides=(1, 1), padding="SAME",
        dimension_numbers=("NCHW", "OIHW", "NCHW"))
    return y + bias[None, :, None, None]


def ref_forward(model, return_layers, x_nchw):
    out, x = {}, x_nchw
    for name, module in model._modules.items():
        if isinstance(module, Conv2dSame):
            x = ref_conv(x, module.w_oihw, module.bias)
        else:
            x = jnp.maximum(x, 0)
        if name in return_layers:
            out[return_layers[name]] = x
        if len(out) == len(return_layers):
            break
    return out


# --------------------------------------------------------------------------
if __name__ == "__main__":
    key = jax.random.PRNGKey(0)
    mkey, xkey = jax.random.split(key)

    model = TinyBackbone(mkey)
    return_layers = {"conv1": "feat1", "relu2": "feat2"}
    getter = IntermediateLayerGetter(model, return_layers)

    x = jax.random.normal(xkey, (2, 4, 16, 16), jnp.float32)  # NCHW like torch

    out = getter(x)
    out = {k: jax.block_until_ready(v) for k, v in out.items()}

    ref = ref_forward(model, return_layers, x)
    assert set(out.keys()) == set(ref.keys())
    for k in out:
        assert out[k].shape == ref[k].shape, (k, out[k].shape, ref[k].shape)
        err = float(jnp.max(jnp.abs(out[k] - ref[k])))
        # bf16 MXU inputs with f32 accumulation: tolerance loosened vs the
        # all-f32 path (per review note).
        assert jnp.allclose(out[k], ref[k], atol=2e-2, rtol=2e-2), (k, err)

    print("KERNEL_OK")
</pallas_src>

<mosaic_0001>
module attributes {stable_mosaic.version = 11 : i64} {
  func.func @kernel(%arg0: i32, %arg1: memref<2x16x128xf32, #tpu.memory_space<vmem>>, %arg2: memref<384x128xbf16, #tpu.memory_space<vmem>>, %arg3: memref<1x128xf32, #tpu.memory_space<vmem>>, %arg4: memref<384x128xbf16, #tpu.memory_space<vmem>>, %arg5: memref<1x128xf32, #tpu.memory_space<vmem>>, %arg6: memref<2x16x128xf32, #tpu.memory_space<vmem>>, %arg7: memref<2x16x128xf32, #tpu.memory_space<vmem>>) attributes {dimension_semantics = [#tpu.dimension_semantics<parallel>], iteration_bounds = array<i64: 1>, scalar_prefetch = 0 : i64, scratch_operands = 0 : i64, tpu.core_type = #tpu.core_type<tc>, window_params = [{transform_indices = @transform_0, window_bounds = array<i64: 2, 16, 128>}, {pipeline_mode = #tpu.pipeline_mode<synchronous>, transform_indices = @transform_1, window_bounds = array<i64: 384, 128>}, {pipeline_mode = #tpu.pipeline_mode<synchronous>, transform_indices = @transform_2, window_bounds = array<i64: 1, 128>}, {pipeline_mode = #tpu.pipeline_mode<synchronous>, transform_indices = @transform_3, window_bounds = array<i64: 384, 128>}, {pipeline_mode = #tpu.pipeline_mode<synchronous>, transform_indices = @transform_4, window_bounds = array<i64: 1, 128>}, {transform_indices = @transform_5, window_bounds = array<i64: 2, 16, 128>}, {transform_indices = @transform_6, window_bounds = array<i64: 2, 16, 128>}]} {
    %c0 = arith.constant 0 : index
    %c0_0 = arith.constant 0 : index
    %c0_1 = arith.constant 0 : index
    %0 = vector.load %arg1[%c0, %c0_0, %c0_1] : memref<2x16x128xf32, #tpu.memory_space<vmem>>, vector<2x16x128xf32>
    %1 = vector.shape_cast %0 : vector<2x16x128xf32> to vector<32x128xf32>
    %2 = tpu.iota {dimensions = array<i32: 1>} : vector<2x16x128xi32>
    %3 = vector.shape_cast %2 : vector<2x16x128xi32> to vector<32x128xi32>
    %c1_i32 = arith.constant 1 : i32
    %4 = vector.broadcast %c1_i32 : i32 to vector<32x128xi32>
    %5 = arith.cmpi sge, %3, %4 : vector<32x128xi32>
    %c14_i32 = arith.constant 14 : i32
    %6 = vector.broadcast %c14_i32 : i32 to vector<32x128xi32>
    %7 = arith.cmpi sle, %3, %6 : vector<32x128xi32>
    %c1_i32_2 = arith.constant 1 : i32
    %8 = tpu.dynamic_rotate %1 by %c1_i32_2 dim 0 : vector<32x128xf32>, i32 -> vector<32x128xf32>
    %c31_i32 = arith.constant 31 : i32
    %9 = tpu.dynamic_rotate %1 by %c31_i32 dim 0 : vector<32x128xf32>, i32 -> vector<32x128xf32>
    %cst = arith.constant 0.000000e+00 : f32
    %10 = vector.broadcast %cst : f32 to vector<32x128xf32>
    %11 = arith.select %5, %8, %10 : vector<32x128xi1>, vector<32x128xf32>
    %cst_3 = arith.constant 0.000000e+00 : f32
    %12 = vector.broadcast %cst_3 : f32 to vector<32x128xf32>
    %13 = arith.select %7, %9, %12 : vector<32x128xi1>, vector<32x128xf32>
    %14 = tpu.concatenate %11, %1, %13 in 1 : vector<32x128xf32>, vector<32x128xf32>, vector<32x128xf32> -> vector<32x384xf32>
    %15 = arith.truncf %14 : vector<32x384xf32> to vector<32x384xbf16>
    %c0_4 = arith.constant 0 : index
    %c0_5 = arith.constant 0 : index
    %16 = vector.load %arg2[%c0_4, %c0_5] : memref<384x128xbf16, #tpu.memory_space<vmem>>, vector<384x128xbf16>
    %cst_6 = arith.constant dense<0.000000e+00> : vector<32x128xf32>
    %17 = tpu.matmul %15, %16, %cst_6 {dimension_numbers = #tpu.dot_dimension_numbers<[1], [0], [0], [1], [0, 0, 1, 1], [], []>} : vector<32x384xbf16>, vector<384x128xbf16>, vector<32x128xf32> -> vector<32x128xf32>
    %c0_7 = arith.constant 0 : index
    %c0_8 = arith.constant 0 : index
    %18 = vector.load %arg3[%c0_7, %c0_8] : memref<1x128xf32, #tpu.memory_space<vmem>>, vector<1x128xf32>
    %19 = vector.broadcast %18 : vector<1x128xf32> to vector<32x128xf32>
    %20 = arith.addf %17, %19 : vector<32x128xf32>
    %21 = vector.shape_cast %20 : vector<32x128xf32> to vector<2x16x128xf32>
    %c0_9 = arith.constant 0 : index
    %c0_10 = arith.constant 0 : index
    %c0_11 = arith.constant 0 : index
    %22 = vector.load %arg6[%c0_9, %c0_10, %c0_11] : memref<2x16x128xf32, #tpu.memory_space<vmem>>, vector<2x16x128xf32>
    tpu.vector_store %arg6[%c0_9, %c0_10, %c0_11], %21 {strides = array<i32>} : memref<2x16x128xf32, #tpu.memory_space<vmem>>, vector<2x16x128xf32>,
    %cst_12 = arith.constant 0.000000e+00 : f32
    %23 = vector.broadcast %cst_12 : f32 to vector<32x128xf32>
    %24 = arith.maximumf %20, %23 : vector<32x128xf32>
    %c1_i32_13 = arith.constant 1 : i32
    %25 = tpu.dynamic_rotate %24 by %c1_i32_13 dim 0 : vector<32x128xf32>, i32 -> vector<32x128xf32>
    %c31_i32_14 = arith.constant 31 : i32
    %26 = tpu.dynamic_rotate %24 by %c31_i32_14 dim 0 : vector<32x128xf32>, i32 -> vector<32x128xf32>
    %cst_15 = arith.constant 0.000000e+00 : f32
    %27 = vector.broadcast %cst_15 : f32 to vector<32x128xf32>
    %28 = arith.select %5, %25, %27 : vector<32x128xi1>, vector<32x128xf32>
    %cst_16 = arith.constant 0.000000e+00 : f32
    %29 = vector.broadcast %cst_16 : f32 to vector<32x128xf32>
    %30 = arith.select %7, %26, %29 : vector<32x128xi1>, vector<32x128xf32>
    %31 = tpu.concatenate %28, %24, %30 in 1 : vector<32x128xf32>, vector<32x128xf32>, vector<32x128xf32> -> vector<32x384xf32>
    %32 = arith.truncf %31 : vector<32x384xf32> to vector<32x384xbf16>
    %c0_17 = arith.constant 0 : index
    %c0_18 = arith.constant 0 : index
    %33 = vector.load %arg4[%c0_17, %c0_18] : memref<384x128xbf16, #tpu.memory_space<vmem>>, vector<384x128xbf16>
    %cst_19 = arith.constant dense<0.000000e+00> : vector<32x128xf32>
    %34 = tpu.matmul %32, %33, %cst_19 {dimension_numbers = #tpu.dot_dimension_numbers<[1], [0], [0], [1], [0, 0, 1, 1], [], []>} : vector<32x384xbf16>, vector<384x128xbf16>, vector<32x128xf32> -> vector<32x128xf32>
    %c0_20 = arith.constant 0 : index
    %c0_21 = arith.constant 0 : index
    %35 = vector.load %arg5[%c0_20, %c0_21] : memref<1x128xf32, #tpu.memory_space<vmem>>, vector<1x128xf32>
    %36 = vector.broadcast %35 : vector<1x128xf32> to vector<32x128xf32>
    %37 = arith.addf %34, %36 : vector<32x128xf32>
    %cst_22 = arith.constant 0.000000e+00 : f32
    %38 = vector.broadcast %cst_22 : f32 to vector<32x128xf32>
    %39 = arith.maximumf %37, %38 : vector<32x128xf32>
    %40 = vector.shape_cast %39 : vector<32x128xf32> to vector<2x16x128xf32>
    %c0_23 = arith.constant 0 : index
    %c0_24 = arith.constant 0 : index
    %c0_25 = arith.constant 0 : index
    %41 = vector.load %arg7[%c0_23, %c0_24, %c0_25] : memref<2x16x128xf32, #tpu.memory_space<vmem>>, vector<2x16x128xf32>
    tpu.vector_store %arg7[%c0_23, %c0_24, %c0_25], %40 {strides = array<i32>} : memref<2x16x128xf32, #tpu.memory_space<vmem>>, vector<2x16x128xf32>,
    return
  }
  func.func @transform_0(%arg0: i32) -> (i32, i32, i32) {
    %c0_i32 = arith.constant 0 : i32
    %c0_i32_0 = arith.constant 0 : i32
    %c0_i32_1 = arith.constant 0 : i32
    return %arg0, %c0_i32, %c0_i32_0 : i32, i32, i32
  }
  func.func @transform_1(%arg0: i32) -> (i32, i32) {
    %c0_i32 = arith.constant 0 : i32
    %c0_i32_0 = arith.constant 0 : i32
    %c0_i32_1 = arith.constant 0 : i32
    return %c0_i32, %c0_i32_0 : i32, i32
  }
  func.func @transform_2(%arg0: i32) -> (i32, i32) {
    %c0_i32 = arith.constant 0 : i32
    %c0_i32_0 = arith.constant 0 : i32
    %c0_i32_1 = arith.constant 0 : i32
    return %c0_i32, %c0_i32_0 : i32, i32
  }
  func.func @transform_3(%arg0: i32) -> (i32, i32) {
    %c0_i32 = arith.constant 0 : i32
    %c0_i32_0 = arith.constant 0 : i32
    %c0_i32_1 = arith.constant 0 : i32
    return %c0_i32, %c0_i32_0 : i32, i32
  }
  func.func @transform_4(%arg0: i32) -> (i32, i32) {
    %c0_i32 = arith.constant 0 : i32
    %c0_i32_0 = arith.constant 0 : i32
    %c0_i32_1 = arith.constant 0 : i32
    return %c0_i32, %c0_i32_0 : i32, i32
  }
  func.func @transform_5(%arg0: i32) -> (i32, i32, i32) {
    %c0_i32 = arith.constant 0 : i32
    %c0_i32_0 = arith.constant 0 : i32
    %c0_i32_1 = arith.constant 0 : i32
    return %arg0, %c0_i32, %c0_i32_0 : i32, i32, i32
  }
  func.func @transform_6(%arg0: i32) -> (i32, i32, i32) {
    %c0_i32 = arith.constant 0 : i32
    %c0_i32_0 = arith.constant 0 : i32
    %c0_i32_1 = arith.constant 0 : i32
    return %arg0, %c0_i32, %c0_i32_0 : i32, i32, i32
  }
}

</mosaic_0001>

<bundles_post_ra>
// kernel: run.1
= control target key start
LH: loop header
LB: loop body
LE: loop exit
PB: predicated region body
PF: predicated region fallthrough
CT: control target
= control target key end

     0   :  { %v27_v15 = vlaneseq  ;;  %vm953_vm4 = vmmov 1   ;;  %s1240_s1 = inlined_call_operand.vmem [shape: bf16[384,128], index: 1, kind: input, shape index: {}]   ;;  %s1241_s0 = inlined_call_operand.vmem [shape: f32[2,16,128], index: 0, kind: input, shape index: {}]   ;;  %s1242_s3 = inlined_call_operand.vmem [shape: bf16[384,128], index: 3, kind: input, shape index: {}]   ;;  %s1243_s2 = inlined_call_operand.vmem [shape: f32[1,128], index: 2, kind: input, shape index: {}]   ;;  %s1244_s5 = inlined_call_operand.vmem [shape: f32[2,16,128], index: 5, kind: output, shape index: {0}]   ;;  %s1245_s4 = inlined_call_operand.vmem [shape: f32[1,128], index: 4, kind: input, shape index: {}]   ;;  %s1246_s6 = inlined_call_operand.vmem [shape: f32[2,16,128], index: 6, kind: output, shape index: {1}]  }
   0x1   :  { %v905_v0 = vld [vmem:[%s1240_s1 + $0x40] sm:$0xff]   ;;  %v907_v2 = vld [vmem:[%s1240_s1 + $0x48] sm:$0xff]   ;;  %v910_v5 = vld [vmem:[%s1240_s1 + $0x50] sm:$0xff]  }
   0x2   :  { %v906_v1 = vld [vmem:[%s1240_s1] sm:$0xff]   ;;  %788 = vmatprep.subr.bf16.mxu0 %v905_v0  ;;  %v909_v4 = vld [vmem:[%s1240_s1 + $0x8] sm:$0xff]   ;;  %v912_v7 = vld [vmem:[%s1240_s1 + $0x10] sm:$0xff]   ;;  %v1043_v19 = vshrl.u32 %v27_v15, 7 }
   0x3   :  { %789 = vmatpush3.bf16.msra.mxu0 %v906_v1  ;;  %v908_v3 = vld [vmem:[%s1240_s1 + $0x80] sm:$0xff]   ;;  %v911_v6 = vld [vmem:[%s1240_s1 + $0x88] sm:$0xff]   ;;  %v913_v8 = vld [vmem:[%s1240_s1 + $0x58] sm:$0xff]  }
   0x4   :  { %790 = vmatprep.subr.bf16.mxu0 %v907_v2  ;;  %864 = vmatprep.subr.bf16.mxu1 %v908_v3  ;;  %v914_v9 = vld [vmem:[%s1240_s1 + $0x90] sm:$0xff]   ;;  %v915_v10 = vld [vmem:[%s1240_s1 + $0x18] sm:$0xff]   ;;  %v916_v11 = vld [vmem:[%s1240_s1 + $0x60] sm:$0xff]   ;;  %v29_v22 = vadd.s32 8, %v1043_v19  ;;  %vm30_vm0 = vcmp.ge.s32.totalorder %v1043_v19, 1  ;;  %vm38_vm1 = vcmp.lt.s32.totalorder %v1043_v19, 1 }
   0x5   :  { %865 = vmatpush3.bf16.msra.mxu1 %v908_v3  ;;  %v917_v12 = vld [vmem:[%s1240_s1 + $0x98] sm:$0xff]   ;;  %v918_v13 = vld [vmem:[%s1240_s1 + $0x20] sm:$0xff]   ;;  %v919_v16 = vld [vmem:[%s1240_s1 + $0x68] sm:$0xff]   ;;  %vm47_vm2 = vcmp.lt.s32.totalorder %v1043_v19, 7 }
   0x6   :  { %866 = vmatprep.subr.bf16.mxu1 %v911_v6  ;;  %v920_v14 = vld [vmem:[%s1240_s1 + $0xa0] sm:$0xff]   ;;  %v921_v17 = vld [vmem:[%s1240_s1 + $0x28] sm:$0xff]   ;;  %v922_v20 = vld [vmem:[%s1240_s1 + $0x70] sm:$0xff]   ;;  %vm33_vm3 = vcmp.le.s32.totalorder %v29_v22, 14 }
   0x7   :  { %791 = vmatpush3.bf16.msra.mxu0 %v909_v4  ;;  %v923_v18 = vld [vmem:[%s1240_s1 + $0xa8] sm:$0xff]   ;;  %v924_v21 = vld [vmem:[%s1240_s1 + $0x30] sm:$0xff]   ;;  %v925_v23 = vld [vmem:[%s1240_s1 + $0x78] sm:$0xff]  }
   0x8   :  { %792 = vmatprep.subr.bf16.mxu0 %v910_v5  ;;  %v926_v24 = vld [vmem:[%s1240_s1 + $0xb0] sm:$0xff]   ;;  %v23_v25 = vld [vmem:[%s1241_s0] sm:$0xff]  ;;  %v24_v26 = vld [vmem:[%s1241_s0 + $0x8] sm:$0xff] }
   0x9   :  { %867 = vmatpush3.bf16.msra.mxu1 %v911_v6  ;;  %v26_v27 = vld [vmem:[%s1241_s0 + $0x18] sm:$0xff]  ;;  %v34_v28 = vrot.slane %v23_v25, 7  ;;  %v35_v29 = vrot.slane %v24_v26, 7  ;;  %v43_v31 = vrot.slane %v23_v25, 1  ;;  %v44_v33 = vrot.slane %v24_v26, 1  ;;  %v25_v35 = vld [vmem:[%s1241_s0 + $0x10] sm:$0xff]  ;;  %vm1078_vm5 = vmpackc.low %vm953_vm4, %vm30_vm0 }
   0xa   :  { %868 = vmatprep.subr.bf16.mxu1 %v914_v9  ;;  %v37_v30 = vrot.slane %v26_v27, 7  ;;  %v927_v32 = vld [vmem:[%s1240_s1 + $0x38] sm:$0xff]   ;;  %v61_v34 = vpack.c.bf16 %v24_v26, %v23_v25  ;;  %v46_v36 = vrot.slane %v26_v27, 1  ;;  %v45_v38 = vrot.slane %v25_v35, 1  ;;  %v929_v44 = vld [vmem:[%s1242_s3 + $0x40] sm:$0xff]   ;;  %vm1097_vm6 = vmpackc.low %vm33_vm3, %vm953_vm4 }
   0xb   :  { %793 = vmatpush3.bf16.msra.mxu0 %v912_v7  ;;  %v41_v39 = vsel %vm38_vm1, %v34_v28, %v35_v29  ;;  %v928_v41 = vld [vmem:[%s1240_s1 + $0xb8] sm:$0xff]   ;;  %v50_v42 = vsel %vm47_vm2, %v43_v31, %v44_v33  ;;  %v930_v50 = vld [vmem:[%s1242_s3 + $0x80] sm:$0xff]   ;;  %v36_v51 = vrot.slane %v25_v35, 7  ;;  %v64_v52 = vpack.c.bf16 %v26_v27, %v25_v35  ;;  %v932_v54 = vld [vmem:[%s1242_s3 + $0x48] sm:$0xff]  }
   0xc   :  { %794 = vmatprep.subr.bf16.mxu0 %v913_v8  ;;  %v42_v40 = vsel %vm38_vm1, %v37_v30, %v34_v28  ;;  %297 = vmatprep.mubr.bf16.mxu0 %v61_v34  ;;  %v49_v43 = vsel %vm47_vm2, %v44_v33, %v45_v38  ;;  %v48_v48 = vsel %vm47_vm2, %v45_v38, %v46_v36  ;;  %v931_v53 = vld [vmem:[%s1242_s3] sm:$0xff]   ;;  %v933_v56 = vld [vmem:[%s1242_s3 + $0x88] sm:$0xff]   ;;  %v935_v61 = vld [vmem:[%s1242_s3 + $0x50] sm:$0xff]  }
   0xd   :  { %869 = vmatpush3.bf16.msra.mxu1 %v914_v9  ;;  %v746_v46 = vpack.c.bf16 %v49_v43, %v50_v42  ;;  %v740_v47 = vpack.c.bf16 %v41_v39, %v42_v40  ;;  %v51_v49 = vsel %vm47_vm2, %v46_v36, %v43_v31  ;;  %v934_v57 = vld [vmem:[%s1242_s3 + $0x8] sm:$0xff]   ;;  %v39_v58 = vsel %vm38_vm1, %v36_v51, %v37_v30  ;;  %v936_v62 = vld [vmem:[%s1242_s3 + $0x90] sm:$0xff]   ;;  %v938_v0 = vld [vmem:[%s1242_s3 + $0x58] sm:$0xff]  }
   0xe   :  { %870 = vmatprep.subr.bf16.mxu1 %v917_v12  ;;  %v749_v55 = vpack.c.bf16 %v51_v49, %v48_v48  ;;  %v40_v59 = vsel %vm38_vm1, %v35_v29, %v36_v51  ;;  %v937_v63 = vld [vmem:[%s1242_s3 + $0x10] sm:$0xff]   ;;  %v939_v1 = vld [vmem:[%s1242_s3 + $0x98] sm:$0xff]   ;;  %v941_v3 = vld [vmem:[%s1242_s3 + $0x60] sm:$0xff]  }
   0xf   :  { %795 = vmatpush3.bf16.msra.mxu0 %v915_v10  ;;  %880 = vmatprep.mubr.msk.bf16.mxu1 %vm1097_vm6, %v746_v46  ;;  %v743_v60 = vpack.c.bf16 %v39_v58, %v40_v59  ;;  %v940_v2 = vld [vmem:[%s1242_s3 + $0x18] sm:$0xff]   ;;  %v942_v4 = vld [vmem:[%s1242_s3 + $0xa0] sm:$0xff]   ;;  %v944_v6 = vld [vmem:[%s1242_s3 + $0x68] sm:$0xff]  }
  0x10   :  { %796 = vmatprep.subr.bf16.mxu0 %v916_v11  ;;  %v943_v5 = vld [vmem:[%s1242_s3 + $0x20] sm:$0xff]   ;;  %v945_v7 = vld [vmem:[%s1242_s3 + $0xa8] sm:$0xff]   ;;  %v947_v9 = vld [vmem:[%s1242_s3 + $0x70] sm:$0xff]  }
  0x11   :  { %871 = vmatpush3.bf16.msra.mxu1 %v917_v12  ;;  %v946_v8 = vld [vmem:[%s1242_s3 + $0x28] sm:$0xff]   ;;  %v948_v10 = vld [vmem:[%s1242_s3 + $0xb0] sm:$0xff]   ;;  %v950_v12 = vld [vmem:[%s1242_s3 + $0x78] sm:$0xff]  }
  0x12   :  { %872 = vmatprep.subr.bf16.mxu1 %v920_v14  ;;  %v949_v11 = vld [vmem:[%s1242_s3 + $0x30] sm:$0xff]  }
  0x13   :  { %797 = vmatpush3.bf16.msra.mxu0 %v918_v13  ;;  %v951_v13 = vld [vmem:[%s1242_s3 + $0xb8] sm:$0xff]  }
  0x14   :  { %798 = vmatprep.subr.bf16.mxu0 %v919_v16 }
  0x15   :  { %873 = vmatpush3.bf16.msra.mxu1 %v920_v14  ;;  %v952_v14 = vld [vmem:[%s1242_s3 + $0x38] sm:$0xff]  }
  0x16   :  { %874 = vmatprep.subr.bf16.mxu1 %v923_v18 }
  0x17   :  { %799 = vmatpush3.bf16.msra.mxu0 %v921_v17  ;;  %v714_v17 = vld [vmem:[%s1243_s2] ss:$0 sm:$0xff] }
  0x18   :  { %800 = vmatprep.subr.bf16.mxu0 %v922_v20 }
  0x19   :  { %875 = vmatpush3.bf16.msra.mxu1 %v923_v18 }
  0x1a   :  { %876 = vmatprep.subr.bf16.mxu1 %v926_v24 }
  0x1b   :  { %801 = vmatpush3.bf16.msra.mxu0 %v924_v21 }
  0x1c   :  { %802 = vmatprep.subr.bf16.mxu0 %v925_v23 }
  0x1d   :  { %877 = vmatpush3.bf16.msra.mxu1 %v926_v24 }
  0x1e   :  { %878 = vmatprep.subr.bf16.mxu1 %v928_v41 }
  0x1f   :  { %803 = vmatpush3.bf16.msra.mxu0 %v927_v32 }
  0x20   :  { %826 = vmatprep.subr.bf16.mxu0 %v929_v44 }
  0x21   :  { %879 = vmatpush3.bf16.msra.mxu1 %v928_v41 }
  0x22   :  { %741 = vmatmul.mubr.msk.bf16.vlgmr.msra.gmra.mrb[0].mxu0 %vm1078_vm5, %v740_v47  ;;  %884 = vmatprep.subr.bf16.mxu1 %v930_v50 }
  0x23   :  { %305 = vmatprep.mubr.bf16.mxu0 %v64_v52  ;;  %827 = vmatpush3.bf16.msra.mxu0 %v931_v53 }
  0x24   :  { %881 = vmatmul.mubr.msk.bf16.vlgmr.msra.gmra.mrb[0].mxu1 %vm1097_vm6, %v749_v55  ;;  %828 = vmatprep.subr.bf16.mxu0 %v932_v54 }
  0x25   :  { %885 = vmatpush3.bf16.msra.mxu1 %v930_v50 }
  0x26   :  { %886 = vmatprep.subr.bf16.mxu1 %v933_v56 }
  0x27   :  { %829 = vmatpush3.bf16.msra.mxu0 %v934_v57 }
  0x28   :  { %830 = vmatprep.subr.bf16.mxu0 %v935_v61 }
  0x29   :  { %887 = vmatpush3.bf16.msra.mxu1 %v933_v56 }
  0x2a   :  { %744 = vmatmul.mubr.msk.bf16.gmra.mrb[4].mxu0 %vm1078_vm5, %v743_v60  ;;  %888 = vmatprep.subr.bf16.mxu1 %v936_v62 }
  0x2b   :  { %831 = vmatpush3.bf16.msra.mxu0 %v937_v63 }
  0x2c   :  { %832 = vmatprep.subr.bf16.mxu0 %v938_v0 }
  0x2d   :  { %889 = vmatpush3.bf16.msra.mxu1 %v936_v62 }
  0x2e   :  { %890 = vmatprep.subr.bf16.mxu1 %v939_v1 }
  0x2f   :  { %833 = vmatpush3.bf16.msra.mxu0 %v940_v2 }
  0x30   :  { %834 = vmatprep.subr.bf16.mxu0 %v941_v3 }
  0x31   :  { %891 = vmatpush3.bf16.msra.mxu1 %v939_v1 }
  0x32   :  { %892 = vmatprep.subr.bf16.mxu1 %v942_v4 }
  0x33   :  { %835 = vmatpush3.bf16.msra.mxu0 %v943_v5 }
  0x34   :  { %836 = vmatprep.subr.bf16.mxu0 %v944_v6 }
  0x35   :  { %893 = vmatpush3.bf16.msra.mxu1 %v942_v4 }
  0x36   :  { %894 = vmatprep.subr.bf16.mxu1 %v945_v7 }
  0x37   :  { %837 = vmatpush3.bf16.msra.mxu0 %v946_v8 }
  0x38   :  { %838 = vmatprep.subr.bf16.mxu0 %v947_v9 }
  0x39   :  { %895 = vmatpush3.bf16.msra.mxu1 %v945_v7  ;;  %v751_v7 = vld [vmem:[%s1245_s4] ss:$0 sm:$0xff] }
  0x3a   :  { %896 = vmatprep.subr.bf16.mxu1 %v948_v10 }
  0x3b   :  { %839 = vmatpush3.bf16.msra.mxu0 %v949_v11 }
  0x3c   :  { %840 = vmatprep.subr.bf16.mxu0 %v950_v12 }
  0x3d   :  { %897 = vmatpush3.bf16.msra.mxu1 %v948_v10 }
  0x3e   :  { %898 = vmatprep.subr.bf16.mxu1 %v951_v13 }
  0x3f   :  { %841 = vmatpush3.bf16.msra.mxu0 %v952_v14 }
  0x41   :  { %899 = vmatpush3.bf16.msra.mxu1 %v951_v13 }
  0xf5   :  { %v804_v15 = vpop.f32.mrb[0].mxu0 }
  0xf6   :  { %v805_v16 = vpop.f32.mrb[1].mxu0 }
  0xf7   :  { %v806_v18 = vadd.f32 %v805_v16, %v804_v15  ;;  %v807_v20 = vpop.f32.mrb[2].mxu0  ;;  %v882_v22 = vpop.f32.mrb[0].mxu1 }
  0xf8   :  { %v808_v21 = vpop.f32.mrb[3].mxu0  ;;  %v348_v25 = vpop.f32.mrb[1].mxu1 }
  0xf9   :  { %v809_v23 = vadd.f32 %v808_v21, %v807_v20  ;;  %v300_v24 = vadd.f32 %v806_v18, %v714_v17  ;;  %v883_v26 = vpop.f32.mrb[2].mxu1 }
  0xfa   :  { %v351_v29 = vpop.f32.mrb[3].mxu1 }
  0xfb   :  { %v349_v27 = vadd.f32 %v348_v25, %v300_v24  ;;  %v303_v28 = vadd.f32 %v809_v23, %v714_v17 }
  0xfd   :  { %363 = vst [vmem:[%s1244_s5] sm:$0xff] %v349_v27  ;;  %v367_v30 = vmax.f32 %v349_v27, 0.0  ;;  %v352_v31 = vadd.f32 %v351_v29, %v303_v28  ;;  %v810_v32 = vpop.f32.mrb[4].mxu0 }
  0xfe   :  { %v811_v33 = vpop.f32.mrb[5].mxu0 }
  0xff   :  { %364 = vst [vmem:[%s1244_s5 + $0x8] sm:$0xff] %v352_v31  ;;  %v368_v34 = vmax.f32 %v352_v31, 0.0  ;;  %v812_v35 = vadd.f32 %v811_v33, %v810_v32  ;;  %v813_v36 = vpop.f32.mrb[6].mxu0  ;;  %v371_v38 = vrot.slane %v367_v30, 7  ;;  %v379_v39 = vrot.slane %v367_v30, 1 }
 0x100   :  { %v814_v40 = vpop.f32.mrb[7].mxu0 }
 0x101   :  { %v372_v41 = vrot.slane %v368_v34, 7  ;;  %v380_v42 = vrot.slane %v368_v34, 1  ;;  %v308_v43 = vadd.f32 %v812_v35, %v714_v17  ;;  %v815_v44 = vadd.f32 %v814_v40, %v813_v36 }
 0x102   :  { %v396_v46 = vpack.c.bf16 %v368_v34, %v367_v30 }
 0x103   :  { %v377_v47 = vsel %vm38_vm1, %v371_v38, %v372_v41  ;;  %v357_v48 = vadd.f32 %v882_v22, %v308_v43  ;;  %v311_v49 = vadd.f32 %v815_v44, %v714_v17  ;;  %v385_v50 = vsel %vm47_vm2, %v379_v39, %v380_v42 }
 0x104   :  { %632 = vmatprep.mubr.bf16.mxu0 %v396_v46 }
 0x105   :  { %365 = vst [vmem:[%s1244_s5 + $0x10] sm:$0xff] %v357_v48  ;;  %v369_v51 = vmax.f32 %v357_v48, 0.0  ;;  %v360_v52 = vadd.f32 %v883_v26, %v311_v49 }
 0x107   :  { %v373_v53 = vrot.slane %v369_v51, 7  ;;  %v381_v54 = vrot.slane %v369_v51, 1  ;;  %366 = vst [vmem:[%s1244_s5 + $0x18] sm:$0xff] %v360_v52  ;;  %v370_v55 = vmax.f32 %v360_v52, 0.0 }
 0x109   :  { %v374_v56 = vrot.slane %v370_v55, 7  ;;  %v382_v57 = vrot.slane %v370_v55, 1  ;;  %v384_v58 = vsel %vm47_vm2, %v380_v42, %v381_v54  ;;  %v399_v59 = vpack.c.bf16 %v370_v55, %v369_v51 }
 0x10a   :  { %v783_v60 = vpack.c.bf16 %v384_v58, %v385_v50  ;;  %v376_v61 = vsel %vm38_vm1, %v372_v41, %v373_v53 }
 0x10b   :  { %v378_v62 = vsel %vm38_vm1, %v374_v56, %v371_v38  ;;  %v383_v63 = vsel %vm47_vm2, %v381_v54, %v382_v57  ;;  %v386_v0 = vsel %vm47_vm2, %v382_v57, %v379_v39  ;;  %v375_v1 = vsel %vm38_vm1, %v373_v53, %v374_v56 }
 0x10c   :  { %v777_v2 = vpack.c.bf16 %v377_v47, %v378_v62  ;;  %900 = vmatprep.mubr.msk.bf16.mxu1 %vm1097_vm6, %v783_v60  ;;  %v786_v3 = vpack.c.bf16 %v386_v0, %v383_v63  ;;  %v780_v4 = vpack.c.bf16 %v375_v1, %v376_v61 }
 0x10e   :  { %778 = vmatmul.mubr.msk.bf16.vlgmr.msra.gmra.mrb[8].mxu0 %vm1078_vm5, %v777_v2  ;;  %901 = vmatmul.mubr.msk.bf16.vlgmr.msra.gmra.mrb[4].mxu1 %vm1097_vm6, %v786_v3 }
 0x10f   :  { %640 = vmatprep.mubr.bf16.mxu0 %v399_v59 }
 0x116   :  { %781 = vmatmul.mubr.msk.bf16.gmra.mrb[12].mxu0 %vm1078_vm5, %v780_v4 }
 0x1e1   :  { %v842_v5 = vpop.f32.mrb[8].mxu0  ;;  %v902_v6 = vpop.f32.mrb[4].mxu1 }
 0x1e2   :  { %v843_v19 = vpop.f32.mrb[9].mxu0  ;;  %v683_v8 = vpop.f32.mrb[5].mxu1 }
 0x1e3   :  { %v844_v9 = vadd.f32 %v843_v19, %v842_v5  ;;  %v845_v10 = vpop.f32.mrb[10].mxu0  ;;  %v903_v11 = vpop.f32.mrb[6].mxu1 }
 0x1e4   :  { %v846_v12 = vpop.f32.mrb[11].mxu0  ;;  %v686_v13 = vpop.f32.mrb[7].mxu1 }
 0x1e5   :  { %v635_v14 = vadd.f32 %v844_v9, %v751_v7  ;;  %v847_v45 = vadd.f32 %v846_v12, %v845_v10 }
 0x1e7   :  { %v684_v15 = vadd.f32 %v683_v8, %v635_v14  ;;  %v638_v16 = vadd.f32 %v847_v45, %v751_v7 }
 0x1e9   :  { %v698_v17 = vmax.f32 %v684_v15, 0.0  ;;  %v687_v37 = vadd.f32 %v686_v13, %v638_v16  ;;  %v848_v18 = vpop.f32.mrb[12].mxu0 }
 0x1ea   :  { %v849_v20 = vpop.f32.mrb[13].mxu0 }
 0x1eb   :  { %702 = vst [vmem:[%s1246_s6] sm:$0xff] %v698_v17  ;;  %v699_v21 = vmax.f32 %v687_v37, 0.0  ;;  %v850_v22 = vadd.f32 %v849_v20, %v848_v18  ;;  %v851_v23 = vpop.f32.mrb[14].mxu0 }
 0x1ec   :  { %v852_v24 = vpop.f32.mrb[15].mxu0 }
 0x1ed   :  { %703 = vst [vmem:[%s1246_s6 + $0x8] sm:$0xff] %v699_v21  ;;  %v643_v25 = vadd.f32 %v850_v22, %v751_v7  ;;  %v853_v26 = vadd.f32 %v852_v24, %v851_v23 }
 0x1ef   :  { %v692_v27 = vadd.f32 %v902_v6, %v643_v25  ;;  %v646_v28 = vadd.f32 %v853_v26, %v751_v7 }
 0x1f1   :  { %v700_v29 = vmax.f32 %v692_v27, 0.0  ;;  %v695_v30 = vadd.f32 %v903_v11, %v646_v28 }
 0x1f3   :  { %704 = vst [vmem:[%s1246_s6 + $0x10] sm:$0xff] %v700_v29  ;;  %v701_v31 = vmax.f32 %v695_v30, 0.0 }
 0x1f5   :  { %705 = vst [vmem:[%s1246_s6 + $0x18] sm:$0xff] %v701_v31 }

</bundles_post_ra>
